<compile_context>
chip_gen: v6e
topology: v6e:2x2x1
jax: 0.10.0
libtpu: 0.0.40
codegen_flags: <defaults>
</compile_context>

<pallas_src>
import functools

import jax
import jax.numpy as jnp
from jax import lax
from jax.experimental import pallas as pl
from jax.experimental.pallas import tpu as pltpu


def _lstm_layer_kernel(hidden_size, t_blk,
                       x_ref, wxh_ref, whh_ref, b_ref, out_ref,
                       h_scr, c_scr, gproj_scr):
    """One LSTM layer over a block of t_blk timesteps.

    Weight / bias columns arrive pre-permuted to [i | f | o | g].
    """
    H = hidden_size
    _, batch, in_features = x_ref.shape
    tb = pl.program_id(0)

    @pl.when(tb == 0)
    def _():
        # h_0 = c_0 = 0 (PyTorch default when hx is None).
        h_scr[...] = jnp.zeros_like(h_scr)
        c_scr[...] = jnp.zeros_like(c_scr)

    # ---- Phase 1: input projection for the whole time block as one big GEMM.
    #      (T_blk*batch, in) x (in, 4H) + bias  ->  stashed in VMEM scratch.
    x_blk = x_ref[...].astype(jnp.float32).reshape(t_blk * batch, in_features)
    gproj = jnp.dot(x_blk, wxh_ref[...],
                    preferred_element_type=jnp.float32) + b_ref[...]
    gproj_scr[...] = gproj.reshape(t_blk, batch, 4 * H)

    # ---- Phase 2: sequential recurrence; only h_{t-1} @ W_hh per step.
    whh = whh_ref[...]   # hoisted: loaded once per grid step.

    def step(t, carry):
        h_prev, c_prev = carry
        gates = gproj_scr[t] + jnp.dot(h_prev, whh,
                                       preferred_element_type=jnp.float32)
        # Columns are [i | f | o | g]: one contiguous sigmoid, one tanh (EUP).
        sig = jax.nn.sigmoid(gates[:, :3 * H])
        i_g = sig[:, 0 * H:1 * H]
        f_g = sig[:, 1 * H:2 * H]
        o_g = sig[:, 2 * H:3 * H]
        g_g = jnp.tanh(gates[:, 3 * H:4 * H])
        c_t = f_g * c_prev + i_g * g_g
        h_t = o_g * jnp.tanh(c_t)
        out_ref[t] = h_t
        return (h_t, c_t)

    h_fin, c_fin = lax.fori_loop(0, t_blk, step,
                                 (h_scr[...], c_scr[...]), unroll=True)
    h_scr[...] = h_fin
    c_scr[...] = c_fin


def _run_layer(x_t, wxh, whh, bias, hidden_size, t_blk):
    """One LSTM layer over the whole (time-major) sequence: (S,B,in)->(S,B,H)."""
    seq_len, batch, in_features = x_t.shape
    H = hidden_size
    num_blocks = seq_len // t_blk
    kernel = functools.partial(_lstm_layer_kernel, H, t_blk)

    return pl.pallas_call(
        kernel,
        out_shape=jax.ShapeDtypeStruct((seq_len, batch, H), jnp.float32),
        grid_spec=pltpu.PrefetchScalarGridSpec(
            num_scalar_prefetch=0,
            grid=(num_blocks,),
            in_specs=[
                # time-blocked activations
                pl.BlockSpec((t_blk, batch, in_features), lambda tb: (tb, 0, 0)),
                # weights / combined bias: constant block index -> VMEM-resident
                pl.BlockSpec((in_features, 4 * H), lambda tb: (0, 0)),
                pl.BlockSpec((H, 4 * H), lambda tb: (0, 0)),
                pl.BlockSpec((1, 4 * H), lambda tb: (0, 0)),
            ],
            out_specs=pl.BlockSpec((t_blk, batch, H), lambda tb: (tb, 0, 0)),
            scratch_shapes=[
                pltpu.VMEM((batch, H), jnp.float32),              # h state
                pltpu.VMEM((batch, H), jnp.float32),              # c state
                pltpu.VMEM((t_blk, batch, 4 * H), jnp.float32),   # x-projection
            ],
        ),
        compiler_params=pltpu.CompilerParams(
            # Recurrence over time: must run grid steps in order.
            dimension_semantics=("arbitrary",),
        ),
    )(x_t, wxh, whh, bias)


def _choose_time_block(seq_len, max_blk=32):
    t = min(seq_len, max_blk)
    while seq_len % t:
        t -= 1
    return t


def _permute_gate_cols(w, hidden_size):
    """Reorder gate columns [i | f | g | o] -> [i | f | o | g] (wrapper-side, free)."""
    H = hidden_size
    return jnp.concatenate([w[..., :2 * H], w[..., 3 * H:4 * H],
                            w[..., 2 * H:3 * H]], axis=-1)


def lstm_forward(x, params, hidden_size, t_blk=None):
    """x: (batch, seq_len, input_size). Returns (seq_len, batch, hidden_size)."""
    batch, seq_len, input_size = x.shape
    xt = jnp.transpose(x, (1, 0, 2)).astype(jnp.float32)   # time-major
    if t_blk is None:
        t_blk = _choose_time_block(seq_len)

    layer_in = xt
    for (wxh, bxh, whh, bhh) in params:
        # Pre-sum biases and pre-permute gate columns -> less work in-kernel.
        bias = (bxh + bhh).reshape(1, 4 * hidden_size).astype(jnp.float32)
        layer_in = _run_layer(
            layer_in,
            _permute_gate_cols(wxh.astype(jnp.float32), hidden_size),
            _permute_gate_cols(whh.astype(jnp.float32), hidden_size),
            _permute_gate_cols(bias, hidden_size),
            hidden_size, t_blk)
    # TODO(synk): for large batch/hidden on v7x, add a 'parallel' batch-tile
    # grid axis, bf16 weights, and hold W_hh in MXU weight registers via
    # pltpu.matmul_push_rhs across timesteps.
    return layer_in


def lstm_reference(x, params, hidden_size):
    """Pure-JAX reference matching the PyTorch forward exactly."""
    batch, seq_len, _ = x.shape
    num_layers = len(params)
    H = hidden_size
    h = [jnp.zeros((batch, H), jnp.float32) for _ in range(num_layers)]
    c = [jnp.zeros((batch, H), jnp.float32) for _ in range(num_layers)]
    outs = []
    for t in range(seq_len):
        inp = x[:, t, :]
        for layer, (wxh, bxh, whh, bhh) in enumerate(params):
            gates = h[layer] @ whh + bhh + inp @ wxh + bxh
            i_g = jax.nn.sigmoid(gates[:, :H])
            f_g = jax.nn.sigmoid(gates[:, H:2 * H])
            g_g = jnp.tanh(gates[:, 2 * H:3 * H])
            o_g = jax.nn.sigmoid(gates[:, 3 * H:])
            c[layer] = f_g * c[layer] + i_g * g_g
            h[layer] = o_g * jnp.tanh(c[layer])
            inp = h[layer]
        outs.append(inp)
    return jnp.stack(outs, axis=0)


def init_params(key, input_size, hidden_size, num_layers):
    """Deterministic init mirroring LSTMCell.reset_parameters (U[-std, std])."""
    std = 1.0 / jnp.sqrt(hidden_size)
    params = []
    for layer in range(num_layers):
        in_features = input_size if layer == 0 else hidden_size
        key, k1, k2, k3, k4 = jax.random.split(key, 5)
        wxh = jax.random.uniform(k1, (in_features, 4 * hidden_size),
                                 jnp.float32, -std, std)
        bxh = jax.random.uniform(k2, (1, 4 * hidden_size), jnp.float32, -std, std)
        whh = jax.random.uniform(k3, (hidden_size, 4 * hidden_size),
                                 jnp.float32, -std, std)
        bhh = jax.random.uniform(k4, (1, 4 * hidden_size), jnp.float32, -std, std)
        params.append((wxh, bxh, whh, bhh))
    return params


if __name__ == "__main__":
    batch = 2
    seq_len = 8
    input_size = 16
    hidden_size = 32
    num_layers = 2

    key = jax.random.PRNGKey(0)
    key, kx = jax.random.split(key)
    x = jax.random.normal(kx, (batch, seq_len, input_size), jnp.float32)
    params = init_params(key, input_size, hidden_size, num_layers)

    out = lstm_forward(x, params, hidden_size)
    out = jax.block_until_ready(out)

    ref = lstm_reference(x, params, hidden_size)
    assert out.shape == (seq_len, batch, hidden_size)
    assert jnp.allclose(out, ref, atol=1e-5, rtol=1e-5), "mismatch vs reference"

    print("KERNEL_OK")
</pallas_src>

<mosaic_0001>
module attributes {stable_mosaic.version = 11 : i64} {
  func.func @_lstm_layer_kernel(%arg0: i32, %arg1: memref<8x2x16xf32, #tpu.memory_space<vmem>>, %arg2: memref<16x128xf32, #tpu.memory_space<vmem>>, %arg3: memref<32x128xf32, #tpu.memory_space<vmem>>, %arg4: memref<1x128xf32, #tpu.memory_space<vmem>>, %arg5: memref<8x2x32xf32, #tpu.memory_space<vmem>>, %arg6: memref<2x32xf32, #tpu.memory_space<vmem>>, %arg7: memref<2x32xf32, #tpu.memory_space<vmem>>, %arg8: memref<8x2x128xf32, #tpu.memory_space<vmem>>) attributes {dimension_semantics = [#tpu.dimension_semantics<arbitrary>], iteration_bounds = array<i64: 1>, scalar_prefetch = 0 : i64, scratch_operands = 3 : i64, tpu.core_type = #tpu.core_type<tc>, window_params = [{transform_indices = @transform_0, window_bounds = array<i64: 8, 2, 16>}, {pipeline_mode = #tpu.pipeline_mode<synchronous>, transform_indices = @transform_1, window_bounds = array<i64: 16, 128>}, {pipeline_mode = #tpu.pipeline_mode<synchronous>, transform_indices = @transform_2, window_bounds = array<i64: 32, 128>}, {pipeline_mode = #tpu.pipeline_mode<synchronous>, transform_indices = @transform_3, window_bounds = array<i64: 1, 128>}, {transform_indices = @transform_4, window_bounds = array<i64: 8, 2, 32>}]} {
    %c0_i32 = arith.constant 0 : i32
    %0 = arith.cmpi eq, %arg0, %c0_i32 : i32
    %1 = arith.extui %0 : i1 to i32
    %c0_i32_0 = arith.constant 0 : i32
    %2 = arith.cmpi ne, %1, %c0_i32_0 : i32
    scf.if %2 {
      %cst_69 = arith.constant 0.000000e+00 : f32
      %217 = vector.broadcast %cst_69 : f32 to vector<2x32xf32>
      %c0_70 = arith.constant 0 : index
      %c0_71 = arith.constant 0 : index
      %218 = vector.load %arg6[%c0_70, %c0_71] : memref<2x32xf32, #tpu.memory_space<vmem>>, vector<2x32xf32>
      tpu.vector_store %arg6[%c0_70, %c0_71], %217 {strides = array<i32>} : memref<2x32xf32, #tpu.memory_space<vmem>>, vector<2x32xf32>,
      %cst_72 = arith.constant 0.000000e+00 : f32
      %219 = vector.broadcast %cst_72 : f32 to vector<2x32xf32>
      %c0_73 = arith.constant 0 : index
      %c0_74 = arith.constant 0 : index
      %220 = vector.load %arg7[%c0_73, %c0_74] : memref<2x32xf32, #tpu.memory_space<vmem>>, vector<2x32xf32>
      tpu.vector_store %arg7[%c0_73, %c0_74], %219 {strides = array<i32>} : memref<2x32xf32, #tpu.memory_space<vmem>>, vector<2x32xf32>,
    } else {
    }
    %c0 = arith.constant 0 : index
    %c0_1 = arith.constant 0 : index
    %c0_2 = arith.constant 0 : index
    %3 = vector.load %arg1[%c0, %c0_1, %c0_2] : memref<8x2x16xf32, #tpu.memory_space<vmem>>, vector<8x2x16xf32>
    %4 = vector.shape_cast %3 : vector<8x2x16xf32> to vector<16x16xf32>
    %c0_3 = arith.constant 0 : index
    %c0_4 = arith.constant 0 : index
    %5 = vector.load %arg2[%c0_3, %c0_4] : memref<16x128xf32, #tpu.memory_space<vmem>>, vector<16x128xf32>
    %cst = arith.constant dense<0.000000e+00> : vector<16x128xf32>
    %6 = tpu.matmul %4, %5, %cst {dimension_numbers = #tpu.dot_dimension_numbers<[1], [0], [0], [1], [0, 0, 1, 1], [], []>} : vector<16x16xf32>, vector<16x128xf32>, vector<16x128xf32> -> vector<16x128xf32>
    %c0_5 = arith.constant 0 : index
    %c0_6 = arith.constant 0 : index
    %7 = vector.load %arg4[%c0_5, %c0_6] : memref<1x128xf32, #tpu.memory_space<vmem>>, vector<1x128xf32>
    %8 = vector.broadcast %7 : vector<1x128xf32> to vector<16x128xf32>
    %9 = arith.addf %6, %8 : vector<16x128xf32>
    %10 = vector.shape_cast %9 : vector<16x128xf32> to vector<8x2x128xf32>
    %c0_7 = arith.constant 0 : index
    %c0_8 = arith.constant 0 : index
    %c0_9 = arith.constant 0 : index
    %11 = vector.load %arg8[%c0_7, %c0_8, %c0_9] : memref<8x2x128xf32, #tpu.memory_space<vmem>>, vector<8x2x128xf32>
    tpu.vector_store %arg8[%c0_7, %c0_8, %c0_9], %10 {strides = array<i32>} : memref<8x2x128xf32, #tpu.memory_space<vmem>>, vector<8x2x128xf32>,
    %c0_10 = arith.constant 0 : index
    %c0_11 = arith.constant 0 : index
    %12 = vector.load %arg3[%c0_10, %c0_11] : memref<32x128xf32, #tpu.memory_space<vmem>>, vector<32x128xf32>
    %c0_12 = arith.constant 0 : index
    %c0_13 = arith.constant 0 : index
    %13 = vector.load %arg6[%c0_12, %c0_13] : memref<2x32xf32, #tpu.memory_space<vmem>>, vector<2x32xf32>
    %c0_14 = arith.constant 0 : index
    %c0_15 = arith.constant 0 : index
    %14 = vector.load %arg7[%c0_14, %c0_15] : memref<2x32xf32, #tpu.memory_space<vmem>>, vector<2x32xf32>
    %c0_i32_16 = arith.constant 0 : i32
    %15 = arith.index_cast %c0_i32_16 : i32 to index
    %c0_17 = arith.constant 0 : index
    %c0_18 = arith.constant 0 : index
    %16 = vector.load %arg8[%15, %c0_17, %c0_18] : memref<8x2x128xf32, #tpu.memory_space<vmem>>, vector<1x2x128xf32>
    %17 = vector.shape_cast %16 : vector<1x2x128xf32> to vector<2x128xf32>
    %cst_19 = arith.constant dense<0.000000e+00> : vector<2x128xf32>
    %18 = tpu.matmul %13, %12, %cst_19 {dimension_numbers = #tpu.dot_dimension_numbers<[1], [0], [0], [1], [0, 0, 1, 1], [], []>} : vector<2x32xf32>, vector<32x128xf32>, vector<2x128xf32> -> vector<2x128xf32>
    %19 = arith.addf %17, %18 : vector<2x128xf32>
    %20 = vector.extract_strided_slice %19 {offsets = [0, 0], sizes = [2, 96], strides = [1, 1]} : vector<2x128xf32> to vector<2x96xf32>
    %21 = arith.negf %20 : vector<2x96xf32>
    %22 = math.exp %21 : vector<2x96xf32>
    %cst_20 = arith.constant 1.000000e+00 : f32
    %23 = vector.broadcast %cst_20 : f32 to vector<2x96xf32>
    %24 = arith.addf %23, %22 : vector<2x96xf32>
    %25 = arith.divf %23, %24 : vector<2x96xf32>
    %26 = vector.extract_strided_slice %25 {offsets = [0, 0], sizes = [2, 32], strides = [1, 1]} : vector<2x96xf32> to vector<2x32xf32>
    %27 = vector.extract_strided_slice %25 {offsets = [0, 32], sizes = [2, 32], strides = [1, 1]} : vector<2x96xf32> to vector<2x32xf32>
    %28 = vector.extract_strided_slice %25 {offsets = [0, 64], sizes = [2, 32], strides = [1, 1]} : vector<2x96xf32> to vector<2x32xf32>
    %29 = vector.extract_strided_slice %19 {offsets = [0, 96], sizes = [2, 32], strides = [1, 1]} : vector<2x128xf32> to vector<2x32xf32>
    %30 = math.tanh %29 : vector<2x32xf32>
    %31 = arith.mulf %27, %14 : vector<2x32xf32>
    %32 = arith.mulf %26, %30 : vector<2x32xf32>
    %33 = arith.addf %31, %32 : vector<2x32xf32>
    %34 = math.tanh %33 : vector<2x32xf32>
    %35 = arith.mulf %28, %34 : vector<2x32xf32>
    %36 = arith.index_cast %c0_i32_16 : i32 to index
    %c0_21 = arith.constant 0 : index
    %c0_22 = arith.constant 0 : index
    %37 = vector.load %arg5[%36, %c0_21, %c0_22] : memref<8x2x32xf32, #tpu.memory_space<vmem>>, vector<1x2x32xf32>
    %38 = vector.shape_cast %37 : vector<1x2x32xf32> to vector<2x32xf32>
    %39 = vector.shape_cast %35 : vector<2x32xf32> to vector<1x2x32xf32>
    tpu.vector_store %arg5[%36, %c0_21, %c0_22], %39 {strides = array<i32>} : memref<8x2x32xf32, #tpu.memory_space<vmem>>, vector<1x2x32xf32>,
    %c1_i32 = arith.constant 1 : i32
    %40 = arith.index_cast %c1_i32 : i32 to index
    %c0_23 = arith.constant 0 : index
    %c0_24 = arith.constant 0 : index
    %41 = vector.load %arg8[%40, %c0_23, %c0_24] : memref<8x2x128xf32, #tpu.memory_space<vmem>>, vector<1x2x128xf32>
    %42 = vector.shape_cast %41 : vector<1x2x128xf32> to vector<2x128xf32>
    %cst_25 = arith.constant dense<0.000000e+00> : vector<2x128xf32>
    %43 = tpu.matmul %35, %12, %cst_25 {dimension_numbers = #tpu.dot_dimension_numbers<[1], [0], [0], [1], [0, 0, 1, 1], [], []>} : vector<2x32xf32>, vector<32x128xf32>, vector<2x128xf32> -> vector<2x128xf32>
    %44 = arith.addf %42, %43 : vector<2x128xf32>
    %45 = vector.extract_strided_slice %44 {offsets = [0, 0], sizes = [2, 96], strides = [1, 1]} : vector<2x128xf32> to vector<2x96xf32>
    %46 = arith.negf %45 : vector<2x96xf32>
    %47 = math.exp %46 : vector<2x96xf32>
    %cst_26 = arith.constant 1.000000e+00 : f32
    %48 = vector.broadcast %cst_26 : f32 to vector<2x96xf32>
    %49 = arith.addf %48, %47 : vector<2x96xf32>
    %50 = arith.divf %48, %49 : vector<2x96xf32>
    %51 = vector.extract_strided_slice %50 {offsets = [0, 0], sizes = [2, 32], strides = [1, 1]} : vector<2x96xf32> to vector<2x32xf32>
    %52 = vector.extract_strided_slice %50 {offsets = [0, 32], sizes = [2, 32], strides = [1, 1]} : vector<2x96xf32> to vector<2x32xf32>
    %53 = vector.extract_strided_slice %50 {offsets = [0, 64], sizes = [2, 32], strides = [1, 1]} : vector<2x96xf32> to vector<2x32xf32>
    %54 = vector.extract_strided_slice %44 {offsets = [0, 96], sizes = [2, 32], strides = [1, 1]} : vector<2x128xf32> to vector<2x32xf32>
    %55 = math.tanh %54 : vector<2x32xf32>
    %56 = arith.mulf %52, %33 : vector<2x32xf32>
    %57 = arith.mulf %51, %55 : vector<2x32xf32>
    %58 = arith.addf %56, %57 : vector<2x32xf32>
    %59 = math.tanh %58 : vector<2x32xf32>
    %60 = arith.mulf %53, %59 : vector<2x32xf32>
    %61 = arith.index_cast %c1_i32 : i32 to index
    %c0_27 = arith.constant 0 : index
    %c0_28 = arith.constant 0 : index
    %62 = vector.load %arg5[%61, %c0_27, %c0_28] : memref<8x2x32xf32, #tpu.memory_space<vmem>>, vector<1x2x32xf32>
    %63 = vector.shape_cast %62 : vector<1x2x32xf32> to vector<2x32xf32>
    %64 = vector.shape_cast %60 : vector<2x32xf32> to vector<1x2x32xf32>
    tpu.vector_store %arg5[%61, %c0_27, %c0_28], %64 {strides = array<i32>} : memref<8x2x32xf32, #tpu.memory_space<vmem>>, vector<1x2x32xf32>,
    %c2_i32 = arith.constant 2 : i32
    %65 = arith.index_cast %c2_i32 : i32 to index
    %c0_29 = arith.constant 0 : index
    %c0_30 = arith.constant 0 : index
    %66 = vector.load %arg8[%65, %c0_29, %c0_30] : memref<8x2x128xf32, #tpu.memory_space<vmem>>, vector<1x2x128xf32>
    %67 = vector.shape_cast %66 : vector<1x2x128xf32> to vector<2x128xf32>
    %cst_31 = arith.constant dense<0.000000e+00> : vector<2x128xf32>
    %68 = tpu.matmul %60, %12, %cst_31 {dimension_numbers = #tpu.dot_dimension_numbers<[1], [0], [0], [1], [0, 0, 1, 1], [], []>} : vector<2x32xf32>, vector<32x128xf32>, vector<2x128xf32> -> vector<2x128xf32>
    %69 = arith.addf %67, %68 : vector<2x128xf32>
    %70 = vector.extract_strided_slice %69 {offsets = [0, 0], sizes = [2, 96], strides = [1, 1]} : vector<2x128xf32> to vector<2x96xf32>
    %71 = arith.negf %70 : vector<2x96xf32>
    %72 = math.exp %71 : vector<2x96xf32>
    %cst_32 = arith.constant 1.000000e+00 : f32
    %73 = vector.broadcast %cst_32 : f32 to vector<2x96xf32>
    %74 = arith.addf %73, %72 : vector<2x96xf32>
    %75 = arith.divf %73, %74 : vector<2x96xf32>
    %76 = vector.extract_strided_slice %75 {offsets = [0, 0], sizes = [2, 32], strides = [1, 1]} : vector<2x96xf32> to vector<2x32xf32>
    %77 = vector.extract_strided_slice %75 {offsets = [0, 32], sizes = [2, 32], strides = [1, 1]} : vector<2x96xf32> to vector<2x32xf32>
    %78 = vector.extract_strided_slice %75 {offsets = [0, 64], sizes = [2, 32], strides = [1, 1]} : vector<2x96xf32> to vector<2x32xf32>
    %79 = vector.extract_strided_slice %69 {offsets = [0, 96], sizes = [2, 32], strides = [1, 1]} : vector<2x128xf32> to vector<2x32xf32>
    %80 = math.tanh %79 : vector<2x32xf32>
    %81 = arith.mulf %77, %58 : vector<2x32xf32>
    %82 = arith.mulf %76, %80 : vector<2x32xf32>
    %83 = arith.addf %81, %82 : vector<2x32xf32>
    %84 = math.tanh %83 : vector<2x32xf32>
    %85 = arith.mulf %78, %84 : vector<2x32xf32>
    %86 = arith.index_cast %c2_i32 : i32 to index
    %c0_33 = arith.constant 0 : index
    %c0_34 = arith.constant 0 : index
    %87 = vector.load %arg5[%86, %c0_33, %c0_34] : memref<8x2x32xf32, #tpu.memory_space<vmem>>, vector<1x2x32xf32>
    %88 = vector.shape_cast %87 : vector<1x2x32xf32> to vector<2x32xf32>
    %89 = vector.shape_cast %85 : vector<2x32xf32> to vector<1x2x32xf32>
    tpu.vector_store %arg5[%86, %c0_33, %c0_34], %89 {strides = array<i32>} : memref<8x2x32xf32, #tpu.memory_space<vmem>>, vector<1x2x32xf32>,
    %c3_i32 = arith.constant 3 : i32
    %90 = arith.index_cast %c3_i32 : i32 to index
    %c0_35 = arith.constant 0 : index
    %c0_36 = arith.constant 0 : index
    %91 = vector.load %arg8[%90, %c0_35, %c0_36] : memref<8x2x128xf32, #tpu.memory_space<vmem>>, vector<1x2x128xf32>
    %92 = vector.shape_cast %91 : vector<1x2x128xf32> to vector<2x128xf32>
    %cst_37 = arith.constant dense<0.000000e+00> : vector<2x128xf32>
    %93 = tpu.matmul %85, %12, %cst_37 {dimension_numbers = #tpu.dot_dimension_numbers<[1], [0], [0], [1], [0, 0, 1, 1], [], []>} : vector<2x32xf32>, vector<32x128xf32>, vector<2x128xf32> -> vector<2x128xf32>
    %94 = arith.addf %92, %93 : vector<2x128xf32>
    %95 = vector.extract_strided_slice %94 {offsets = [0, 0], sizes = [2, 96], strides = [1, 1]} : vector<2x128xf32> to vector<2x96xf32>
    %96 = arith.negf %95 : vector<2x96xf32>
    %97 = math.exp %96 : vector<2x96xf32>
    %cst_38 = arith.constant 1.000000e+00 : f32
    %98 = vector.broadcast %cst_38 : f32 to vector<2x96xf32>
    %99 = arith.addf %98, %97 : vector<2x96xf32>
    %100 = arith.divf %98, %99 : vector<2x96xf32>
    %101 = vector.extract_strided_slice %100 {offsets = [0, 0], sizes = [2, 32], strides = [1, 1]} : vector<2x96xf32> to vector<2x32xf32>
    %102 = vector.extract_strided_slice %100 {offsets = [0, 32], sizes = [2, 32], strides = [1, 1]} : vector<2x96xf32> to vector<2x32xf32>
    %103 = vector.extract_strided_slice %100 {offsets = [0, 64], sizes = [2, 32], strides = [1, 1]} : vector<2x96xf32> to vector<2x32xf32>
    %104 = vector.extract_strided_slice %94 {offsets = [0, 96], sizes = [2, 32], strides = [1, 1]} : vector<2x128xf32> to vector<2x32xf32>
    %105 = math.tanh %104 : vector<2x32xf32>
    %106 = arith.mulf %102, %83 : vector<2x32xf32>
    %107 = arith.mulf %101, %105 : vector<2x32xf32>
    %108 = arith.addf %106, %107 : vector<2x32xf32>
    %109 = math.tanh %108 : vector<2x32xf32>
    %110 = arith.mulf %103, %109 : vector<2x32xf32>
    %111 = arith.index_cast %c3_i32 : i32 to index
    %c0_39 = arith.constant 0 : index
    %c0_40 = arith.constant 0 : index
    %112 = vector.load %arg5[%111, %c0_39, %c0_40] : memref<8x2x32xf32, #tpu.memory_space<vmem>>, vector<1x2x32xf32>
    %113 = vector.shape_cast %112 : vector<1x2x32xf32> to vector<2x32xf32>
    %114 = vector.shape_cast %110 : vector<2x32xf32> to vector<1x2x32xf32>
    tpu.vector_store %arg5[%111, %c0_39, %c0_40], %114 {strides = array<i32>} : memref<8x2x32xf32, #tpu.memory_space<vmem>>, vector<1x2x32xf32>,
    %c4_i32 = arith.constant 4 : i32
    %115 = arith.index_cast %c4_i32 : i32 to index
    %c0_41 = arith.constant 0 : index
    %c0_42 = arith.constant 0 : index
    %116 = vector.load %arg8[%115, %c0_41, %c0_42] : memref<8x2x128xf32, #tpu.memory_space<vmem>>, vector<1x2x128xf32>
    %117 = vector.shape_cast %116 : vector<1x2x128xf32> to vector<2x128xf32>
    %cst_43 = arith.constant dense<0.000000e+00> : vector<2x128xf32>
    %118 = tpu.matmul %110, %12, %cst_43 {dimension_numbers = #tpu.dot_dimension_numbers<[1], [0], [0], [1], [0, 0, 1, 1], [], []>} : vector<2x32xf32>, vector<32x128xf32>, vector<2x128xf32> -> vector<2x128xf32>
    %119 = arith.addf %117, %118 : vector<2x128xf32>
    %120 = vector.extract_strided_slice %119 {offsets = [0, 0], sizes = [2, 96], strides = [1, 1]} : vector<2x128xf32> to vector<2x96xf32>
    %121 = arith.negf %120 : vector<2x96xf32>
    %122 = math.exp %121 : vector<2x96xf32>
    %cst_44 = arith.constant 1.000000e+00 : f32
    %123 = vector.broadcast %cst_44 : f32 to vector<2x96xf32>
    %124 = arith.addf %123, %122 : vector<2x96xf32>
    %125 = arith.divf %123, %124 : vector<2x96xf32>
    %126 = vector.extract_strided_slice %125 {offsets = [0, 0], sizes = [2, 32], strides = [1, 1]} : vector<2x96xf32> to vector<2x32xf32>
    %127 = vector.extract_strided_slice %125 {offsets = [0, 32], sizes = [2, 32], strides = [1, 1]} : vector<2x96xf32> to vector<2x32xf32>
    %128 = vector.extract_strided_slice %125 {offsets = [0, 64], sizes = [2, 32], strides = [1, 1]} : vector<2x96xf32> to vector<2x32xf32>
    %129 = vector.extract_strided_slice %119 {offsets = [0, 96], sizes = [2, 32], strides = [1, 1]} : vector<2x128xf32> to vector<2x32xf32>
    %130 = math.tanh %129 : vector<2x32xf32>
    %131 = arith.mulf %127, %108 : vector<2x32xf32>
    %132 = arith.mulf %126, %130 : vector<2x32xf32>
    %133 = arith.addf %131, %132 : vector<2x32xf32>
    %134 = math.tanh %133 : vector<2x32xf32>
    %135 = arith.mulf %128, %134 : vector<2x32xf32>
    %136 = arith.index_cast %c4_i32 : i32 to index
    %c0_45 = arith.constant 0 : index
    %c0_46 = arith.constant 0 : index
    %137 = vector.load %arg5[%136, %c0_45, %c0_46] : memref<8x2x32xf32, #tpu.memory_space<vmem>>, vector<1x2x32xf32>
    %138 = vector.shape_cast %137 : vector<1x2x32xf32> to vector<2x32xf32>
    %139 = vector.shape_cast %135 : vector<2x32xf32> to vector<1x2x32xf32>
    tpu.vector_store %arg5[%136, %c0_45, %c0_46], %139 {strides = array<i32>} : memref<8x2x32xf32, #tpu.memory_space<vmem>>, vector<1x2x32xf32>,
    %c5_i32 = arith.constant 5 : i32
    %140 = arith.index_cast %c5_i32 : i32 to index
    %c0_47 = arith.constant 0 : index
    %c0_48 = arith.constant 0 : index
    %141 = vector.load %arg8[%140, %c0_47, %c0_48] : memref<8x2x128xf32, #tpu.memory_space<vmem>>, vector<1x2x128xf32>
    %142 = vector.shape_cast %141 : vector<1x2x128xf32> to vector<2x128xf32>
    %cst_49 = arith.constant dense<0.000000e+00> : vector<2x128xf32>
    %143 = tpu.matmul %135, %12, %cst_49 {dimension_numbers = #tpu.dot_dimension_numbers<[1], [0], [0], [1], [0, 0, 1, 1], [], []>} : vector<2x32xf32>, vector<32x128xf32>, vector<2x128xf32> -> vector<2x128xf32>
    %144 = arith.addf %142, %143 : vector<2x128xf32>
    %145 = vector.extract_strided_slice %144 {offsets = [0, 0], sizes = [2, 96], strides = [1, 1]} : vector<2x128xf32> to vector<2x96xf32>
    %146 = arith.negf %145 : vector<2x96xf32>
    %147 = math.exp %146 : vector<2x96xf32>
    %cst_50 = arith.constant 1.000000e+00 : f32
    %148 = vector.broadcast %cst_50 : f32 to vector<2x96xf32>
    %149 = arith.addf %148, %147 : vector<2x96xf32>
    %150 = arith.divf %148, %149 : vector<2x96xf32>
    %151 = vector.extract_strided_slice %150 {offsets = [0, 0], sizes = [2, 32], strides = [1, 1]} : vector<2x96xf32> to vector<2x32xf32>
    %152 = vector.extract_strided_slice %150 {offsets = [0, 32], sizes = [2, 32], strides = [1, 1]} : vector<2x96xf32> to vector<2x32xf32>
    %153 = vector.extract_strided_slice %150 {offsets = [0, 64], sizes = [2, 32], strides = [1, 1]} : vector<2x96xf32> to vector<2x32xf32>
    %154 = vector.extract_strided_slice %144 {offsets = [0, 96], sizes = [2, 32], strides = [1, 1]} : vector<2x128xf32> to vector<2x32xf32>
    %155 = math.tanh %154 : vector<2x32xf32>
    %156 = arith.mulf %152, %133 : vector<2x32xf32>
    %157 = arith.mulf %151, %155 : vector<2x32xf32>
    %158 = arith.addf %156, %157 : vector<2x32xf32>
    %159 = math.tanh %158 : vector<2x32xf32>
    %160 = arith.mulf %153, %159 : vector<2x32xf32>
    %161 = arith.index_cast %c5_i32 : i32 to index
    %c0_51 = arith.constant 0 : index
    %c0_52 = arith.constant 0 : index
    %162 = vector.load %arg5[%161, %c0_51, %c0_52] : memref<8x2x32xf32, #tpu.memory_space<vmem>>, vector<1x2x32xf32>
    %163 = vector.shape_cast %162 : vector<1x2x32xf32> to vector<2x32xf32>
    %164 = vector.shape_cast %160 : vector<2x32xf32> to vector<1x2x32xf32>
    tpu.vector_store %arg5[%161, %c0_51, %c0_52], %164 {strides = array<i32>} : memref<8x2x32xf32, #tpu.memory_space<vmem>>, vector<1x2x32xf32>,
    %c6_i32 = arith.constant 6 : i32
    %165 = arith.index_cast %c6_i32 : i32 to index
    %c0_53 = arith.constant 0 : index
    %c0_54 = arith.constant 0 : index
    %166 = vector.load %arg8[%165, %c0_53, %c0_54] : memref<8x2x128xf32, #tpu.memory_space<vmem>>, vector<1x2x128xf32>
    %167 = vector.shape_cast %166 : vector<1x2x128xf32> to vector<2x128xf32>
    %cst_55 = arith.constant dense<0.000000e+00> : vector<2x128xf32>
    %168 = tpu.matmul %160, %12, %cst_55 {dimension_numbers = #tpu.dot_dimension_numbers<[1], [0], [0], [1], [0, 0, 1, 1], [], []>} : vector<2x32xf32>, vector<32x128xf32>, vector<2x128xf32> -> vector<2x128xf32>
    %169 = arith.addf %167, %168 : vector<2x128xf32>
    %170 = vector.extract_strided_slice %169 {offsets = [0, 0], sizes = [2, 96], strides = [1, 1]} : vector<2x128xf32> to vector<2x96xf32>
    %171 = arith.negf %170 : vector<2x96xf32>
    %172 = math.exp %171 : vector<2x96xf32>
    %cst_56 = arith.constant 1.000000e+00 : f32
    %173 = vector.broadcast %cst_56 : f32 to vector<2x96xf32>
    %174 = arith.addf %173, %172 : vector<2x96xf32>
    %175 = arith.divf %173, %174 : vector<2x96xf32>
    %176 = vector.extract_strided_slice %175 {offsets = [0, 0], sizes = [2, 32], strides = [1, 1]} : vector<2x96xf32> to vector<2x32xf32>
    %177 = vector.extract_strided_slice %175 {offsets = [0, 32], sizes = [2, 32], strides = [1, 1]} : vector<2x96xf32> to vector<2x32xf32>
    %178 = vector.extract_strided_slice %175 {offsets = [0, 64], sizes = [2, 32], strides = [1, 1]} : vector<2x96xf32> to vector<2x32xf32>
    %179 = vector.extract_strided_slice %169 {offsets = [0, 96], sizes = [2, 32], strides = [1, 1]} : vector<2x128xf32> to vector<2x32xf32>
    %180 = math.tanh %179 : vector<2x32xf32>
    %181 = arith.mulf %177, %158 : vector<2x32xf32>
    %182 = arith.mulf %176, %180 : vector<2x32xf32>
    %183 = arith.addf %181, %182 : vector<2x32xf32>
    %184 = math.tanh %183 : vector<2x32xf32>
    %185 = arith.mulf %178, %184 : vector<2x32xf32>
    %186 = arith.index_cast %c6_i32 : i32 to index
    %c0_57 = arith.constant 0 : index
    %c0_58 = arith.constant 0 : index
    %187 = vector.load %arg5[%186, %c0_57, %c0_58] : memref<8x2x32xf32, #tpu.memory_space<vmem>>, vector<1x2x32xf32>
    %188 = vector.shape_cast %187 : vector<1x2x32xf32> to vector<2x32xf32>
    %189 = vector.shape_cast %185 : vector<2x32xf32> to vector<1x2x32xf32>
    tpu.vector_store %arg5[%186, %c0_57, %c0_58], %189 {strides = array<i32>} : memref<8x2x32xf32, #tpu.memory_space<vmem>>, vector<1x2x32xf32>,
    %c7_i32 = arith.constant 7 : i32
    %190 = arith.index_cast %c7_i32 : i32 to index
    %c0_59 = arith.constant 0 : index
    %c0_60 = arith.constant 0 : index
    %191 = vector.load %arg8[%190, %c0_59, %c0_60] : memref<8x2x128xf32, #tpu.memory_space<vmem>>, vector<1x2x128xf32>
    %192 = vector.shape_cast %191 : vector<1x2x128xf32> to vector<2x128xf32>
    %cst_61 = arith.constant dense<0.000000e+00> : vector<2x128xf32>
    %193 = tpu.matmul %185, %12, %cst_61 {dimension_numbers = #tpu.dot_dimension_numbers<[1], [0], [0], [1], [0, 0, 1, 1], [], []>} : vector<2x32xf32>, vector<32x128xf32>, vector<2x128xf32> -> vector<2x128xf32>
    %194 = arith.addf %192, %193 : vector<2x128xf32>
    %195 = vector.extract_strided_slice %194 {offsets = [0, 0], sizes = [2, 96], strides = [1, 1]} : vector<2x128xf32> to vector<2x96xf32>
    %196 = arith.negf %195 : vector<2x96xf32>
    %197 = math.exp %196 : vector<2x96xf32>
    %cst_62 = arith.constant 1.000000e+00 : f32
    %198 = vector.broadcast %cst_62 : f32 to vector<2x96xf32>
    %199 = arith.addf %198, %197 : vector<2x96xf32>
    %200 = arith.divf %198, %199 : vector<2x96xf32>
    %201 = vector.extract_strided_slice %200 {offsets = [0, 0], sizes = [2, 32], strides = [1, 1]} : vector<2x96xf32> to vector<2x32xf32>
    %202 = vector.extract_strided_slice %200 {offsets = [0, 32], sizes = [2, 32], strides = [1, 1]} : vector<2x96xf32> to vector<2x32xf32>
    %203 = vector.extract_strided_slice %200 {offsets = [0, 64], sizes = [2, 32], strides = [1, 1]} : vector<2x96xf32> to vector<2x32xf32>
    %204 = vector.extract_strided_slice %194 {offsets = [0, 96], sizes = [2, 32], strides = [1, 1]} : vector<2x128xf32> to vector<2x32xf32>
    %205 = math.tanh %204 : vector<2x32xf32>
    %206 = arith.mulf %202, %183 : vector<2x32xf32>
    %207 = arith.mulf %201, %205 : vector<2x32xf32>
    %208 = arith.addf %206, %207 : vector<2x32xf32>
    %209 = math.tanh %208 : vector<2x32xf32>
    %210 = arith.mulf %203, %209 : vector<2x32xf32>
    %211 = arith.index_cast %c7_i32 : i32 to index
    %c0_63 = arith.constant 0 : index
    %c0_64 = arith.constant 0 : index
    %212 = vector.load %arg5[%211, %c0_63, %c0_64] : memref<8x2x32xf32, #tpu.memory_space<vmem>>, vector<1x2x32xf32>
    %213 = vector.shape_cast %212 : vector<1x2x32xf32> to vector<2x32xf32>
    %214 = vector.shape_cast %210 : vector<2x32xf32> to vector<1x2x32xf32>
    tpu.vector_store %arg5[%211, %c0_63, %c0_64], %214 {strides = array<i32>} : memref<8x2x32xf32, #tpu.memory_space<vmem>>, vector<1x2x32xf32>,
    %c8_i32 = arith.constant 8 : i32
    %c0_65 = arith.constant 0 : index
    %c0_66 = arith.constant 0 : index
    %215 = vector.load %arg6[%c0_65, %c0_66] : memref<2x32xf32, #tpu.memory_space<vmem>>, vector<2x32xf32>
    tpu.vector_store %arg6[%c0_65, %c0_66], %210 {strides = array<i32>} : memref<2x32xf32, #tpu.memory_space<vmem>>, vector<2x32xf32>,
    %c0_67 = arith.constant 0 : index
    %c0_68 = arith.constant 0 : index
    %216 = vector.load %arg7[%c0_67, %c0_68] : memref<2x32xf32, #tpu.memory_space<vmem>>, vector<2x32xf32>
    tpu.vector_store %arg7[%c0_67, %c0_68], %208 {strides = array<i32>} : memref<2x32xf32, #tpu.memory_space<vmem>>, vector<2x32xf32>,
    return
  }
  func.func @transform_0(%arg0: i32) -> (i32, i32, i32) {
    %c0_i32 = arith.constant 0 : i32
    %c0_i32_0 = arith.constant 0 : i32
    %c0_i32_1 = arith.constant 0 : i32
    return %arg0, %c0_i32, %c0_i32_0 : i32, i32, i32
  }
  func.func @transform_1(%arg0: i32) -> (i32, i32) {
    %c0_i32 = arith.constant 0 : i32
    %c0_i32_0 = arith.constant 0 : i32
    %c0_i32_1 = arith.constant 0 : i32
    return %c0_i32, %c0_i32_0 : i32, i32
  }
  func.func @transform_2(%arg0: i32) -> (i32, i32) {
    %c0_i32 = arith.constant 0 : i32
    %c0_i32_0 = arith.constant 0 : i32
    %c0_i32_1 = arith.constant 0 : i32
    return %c0_i32, %c0_i32_0 : i32, i32
  }
  func.func @transform_3(%arg0: i32) -> (i32, i32) {
    %c0_i32 = arith.constant 0 : i32
    %c0_i32_0 = arith.constant 0 : i32
    %c0_i32_1 = arith.constant 0 : i32
    return %c0_i32, %c0_i32_0 : i32, i32
  }
  func.func @transform_4(%arg0: i32) -> (i32, i32, i32) {
    %c0_i32 = arith.constant 0 : i32
    %c0_i32_0 = arith.constant 0 : i32
    %c0_i32_1 = arith.constant 0 : i32
    return %arg0, %c0_i32, %c0_i32_0 : i32, i32, i32
  }
}

</mosaic_0001>

<bundles_post_ra>
// kernel: tpu_custom_call.1
= control target key start
LH: loop header
LB: loop body
LE: loop exit
PB: predicated region body
PF: predicated region fallthrough
CT: control target
= control target key end

     0   :  { %9 = vsyncpa [#allocation6], 0  ;;  %s1671_s0 = inlined_call_operand.hbm [shape: f32[8,2,16], index: 0, kind: input, shape index: {}]   ;;  %s1672_s1 = inlined_call_operand.hbm [shape: f32[16,128], index: 1, kind: input, shape index: {}]   ;;  %s1673_s2 = inlined_call_operand.hbm [shape: f32[32,128], index: 2, kind: input, shape index: {}]   ;;  %s1674_s3 = inlined_call_operand.vmem [shape: f32[1,128], index: 3, kind: input, shape index: {}]   ;;  %s1675_s4 = inlined_call_operand.hbm [shape: f32[8,2,32], index: 4, kind: output, shape index: {}]  }
   0x1   :  { %10 = vsyncpa [#allocation9], 0 }
   0x2   :  { %11 = vsyncpa [#allocation7], 0  ;;  %s1457_s15 = smov [#allocation8]  }
   0x3   :  { %s29_s16 = sshll.u32 %s1457_s15, 4  ;;  %s30_s16 = int_to_ptr.vmem [resolvable:$true] %s29_s16 }
   0x4   :  { %s1379_s17 = scalar_lea.vmem %s30_s16, 256  ;;  %p1384_p1 = scmp.lt.s32.totalorder %s30_s16, %s30_s16 }
   0x5   :  { %p1380_p0 = scmp.ne.s32.totalorder %s30_s16, %s1379_s17  ;;  %p1385_p2 = scmp.lt.s32.totalorder %s1379_s17, %s1379_s17 }
   0x7   :  { %p1386_p3 = por %p1385_p2, %p1384_p1 }
   0x9   :  { %p1387_p4 = pnand %p1386_p3, %p1380_p0 }
   0xb   :  { %1390 = shalt.err (!%p1387_p4)
}
   0xc   :  { %s1458_s18 = smov 128   ;;  %s1459_s19 = smov 8  }
   0xd   :  { %35 = dma.hbm_to_vmem [thread:$0]  %s1672_s1, 256, %s30_s16, [#allocation9], %s1458_s18, %s1458_s18, %s1459_s19  }
   0xe   :  { %s1460_s22 = smov [#allocation5]  }
   0xf   :  { %s17_s23 = sshll.u32 %s1460_s22, 4  ;;  %s18_s23 = int_to_ptr.vmem [resolvable:$true] %s17_s23 }
  0x10   :  { %s1399_s24 = scalar_lea.vmem %s18_s23, 256  ;;  %p1404_p6 = scmp.lt.s32.totalorder %s18_s23, %s18_s23 }
  0x11   :  { %p1400_p5 = scmp.ne.s32.totalorder %s18_s23, %s1399_s24  ;;  %p1405_p7 = scmp.lt.s32.totalorder %s1399_s24, %s1399_s24 }
  0x13   :  { %p1406_p8 = por %p1405_p7, %p1404_p6 }
  0x15   :  { %p1407_p9 = pnand %p1406_p8, %p1400_p5 }
  0x17   :  { %1410 = shalt.err (!%p1407_p9)
}
  0x18   :  { %s1461_s25 = smov 32   ;;  %s1462_s26 = smov 2  }
  0x19   :  { %23 = dma.hbm_to_vmem [thread:$0]  %s1671_s0, 256, %s18_s23, [#allocation6], %s1461_s25, %s1461_s25, %s1462_s26  }
  0x1a   :  { %s1463_s1 = smov [#allocation10]  }
  0x1b   :  { %s41_s29 = sshll.u32 %s1463_s1, 4  ;;  %s42_s29 = int_to_ptr.vmem [resolvable:$true] %s41_s29 }
  0x1c   :  { %s1419_s30 = scalar_lea.vmem %s42_s29, 512  ;;  %p1424_p11 = scmp.lt.s32.totalorder %s42_s29, %s42_s29 }
  0x1d   :  { %p1420_p10 = scmp.ne.s32.totalorder %s42_s29, %s1419_s30  ;;  %p1425_p12 = scmp.lt.s32.totalorder %s1419_s30, %s1419_s30 }
  0x1f   :  { %p1426_p13 = por %p1425_p12, %p1424_p11 }
  0x21   :  { %p1427_p0 = pnand %p1426_p13, %p1420_p10 }
  0x23   :  { %1430 = shalt.err (!%p1427_p0)
}
  0x24   :  { %47 = dma.hbm_to_vmem [thread:$0]  %s1673_s2, 512, %s42_s29, [#allocation9], %s1458_s18, %s1458_s18, %s1459_s19  }
  0x25   :  { %1451 = dma.done.wait [#allocation6], 256  }
  0x26   :  { %1452 = vsyncadd [#allocation6], 4294967040 }
  0x27   :  { %1453 = dma.done.wait [#allocation9], 768  }
  0x28   :  { %1454 = vsyncadd [#allocation9], 4294966528  ;;  %v96_v0 = vlaneseq  ;;  %v1464_v1 = vmov 1983009808   ;;  %v1465_v3 = vmov 0.0   ;;  %vm63_vm0 = vcmask 254976  }
  0x29   :  { %v94_v2 = vunpack.c.l.s4 %v1464_v1  ;;  %1206 = vmatprep.subr.mxu1 %v1465_v3  ;;  %vm1466_vm1 = vmmov 0   ;;  %64 = vst.msk [vmem:[#allocation2] sm:$0x3] %vm63_vm0, %v1465_v3  ;;  %65 = vst.msk [vmem:[#allocation3] sm:$0x3] %vm63_vm0, %v1465_v3  ;;  %v75_v6 = vld [vmem:[#allocation8 + $0x8] sm:$0xff] }
  0x2a   :  { %1214 = vmatprep.mubr.msk.f32.mxu1 %vm1466_vm1, %v1465_v3  ;;  %v97_v5 = vshrl.u32 %v96_v0, 7  ;;  %v74_v7 = vld [vmem:[#allocation8] sm:$0xff]  ;;  %v66_v8 = vld [vmem:[#allocation5] sm:$0x3]  ;;  %1199 = vmatprep.subr.mxu0 %v75_v6  ;;  %v67_v10 = vld [vmem:[#allocation5 + $0x2] sm:$0x3] }
  0x2b   :  { %v95_v4 = vunpack.c.0.s8 %v94_v2  ;;  %v68_v11 = vld [vmem:[#allocation5 + $0x4] sm:$0x3]  ;;  %v69_v12 = vld [vmem:[#allocation5 + $0x6] sm:$0x3]  ;;  %1200 = vmatpush3.msra.mxu0 %v75_v6  ;;  %v91_v13 = vcombine.low %v66_v8, %v67_v10  ;;  %v70_v15 = vld [vmem:[#allocation5 + $0x8] sm:$0x3] }
  0x2c   :  { %v92_v14 = vcombine.low %v68_v11, %v69_v12  ;;  %v71_v16 = vld [vmem:[#allocation5 + $0xa] sm:$0x3]  ;;  %v72_v17 = vld [vmem:[#allocation5 + $0xc] sm:$0x3]  ;;  %1201 = vmatprep.subr.mxu0 %v74_v7  ;;  %v73_v18 = vld [vmem:[#allocation5 + $0xe] sm:$0x3] }
  0x2d   :  { %v1514_v9 = vsub.s32 %v95_v4, %v97_v5  ;;  %v108_v19 = vcombine.low %v70_v15, %v71_v16  ;;  %v1516_v20 = vld [vmem:[#allocation10 + $0x18] sm:$0xff]  ;;  %v1518_v21 = vld [vmem:[#allocation10 + $0x10] sm:$0xff]  ;;  %1202 = vmatpush3.msra.mxu0 %v74_v7  ;;  %v109_v24 = vcombine.low %v72_v17, %v73_v18  ;;  %vm125_vm2 = vcmask 130048   ;;  %v1525_v26 = vld [vmem:[#allocation10 + $0x8] sm:$0xff]  ;;  %s1468_s7 = smov 96   ;;  %s1469_s8 = smov [#allocation11]  }
  0x2e   :  { %1207 = vmatpush3.msra.mxu1 %v1516_v20  ;;  %1217 = vmatprep.subr.mxu0 %v1465_v3  ;;  %v1531_v29 = vld [vmem:[#allocation10] sm:$0xff]  ;;  %vm264_vm3 = vcmask 261120   ;;  %v1132_v32 = vld [vmem:[%s1674_s3] ss:$0 sm:$0xff]  ;;  %s1467_s3 = smov 64   ;;  %s1119_s9 = sshll.u32 %s1469_s8, 4  ;;  %s1120_s9 = int_to_ptr.vmem [resolvable:$true] %s1119_s9 }
  0x2f   :  { %v99_v22 = vrot.slane %v91_v13, %v1514_v9  ;;  %v106_v23 = vrot.slane %v92_v14, %v1514_v9  ;;  %v116_v25 = vrot.slane %v108_v19, %v1514_v9  ;;  %1208 = vmatprep.subr.mxu1 %v1465_v3  ;;  %v123_v28 = vrot.slane %v109_v24, %v1514_v9  ;;  %s1431_s10 = scalar_lea.vmem %s1120_s9, 256  ;;  %p1436_p2 = scmp.lt.s32.totalorder %s1120_s9, %s1120_s9 }
  0x30   :  { %1209 = vmatpush3.msra.mxu1 %v1518_v21  ;;  %v261_v31 = vld [vmem:[#allocation2] sm:$0x3]  ;;  %v262_v52 = vld [vmem:[#allocation3] sm:$0x3]  ;;  %p1432_p1 = scmp.ne.s32.totalorder %s1120_s9, %s1431_s10  ;;  %p1437_p3 = scmp.lt.s32.totalorder %s1431_s10, %s1431_s10 }
  0x31   :  { %v107_v27 = vcombine.low %v99_v22, %v106_v23  ;;  %1210 = vmatprep.subr.mxu1 %v1465_v3  ;;  %v124_v30 = vcombine.low %v116_v25, %v123_v28 }
  0x32   :  { %1211 = vmatpush3.msra.mxu1 %v1525_v26  ;;  %p1438_p4 = por %p1437_p3, %p1436_p2 }
  0x33   :  { %1203 = vmatprep.mubr.msk.f32.mxu0 %vm125_vm2, %v107_v27  ;;  %1212 = vmatprep.subr.mxu1 %v1465_v3 }
  0x34   :  { %1204 = vmatmul.mubr.msk.f32.vlgmr.msra.gmra.mxu0 %vm125_vm2, %v124_v30  ;;  %1213 = vmatpush3.msra.mxu1 %v1531_v29  ;;  %p1439_p5 = pnand %p1438_p4, %p1432_p1 }
  0x35   :  { %1215 = vmatmul.mubr.msk.f32.vlgmr.msra.gmra.mxu1 %vm264_vm3, %v261_v31  ;;  %1218 = vmatpush3.msra.mxu0 %v1516_v20 }
  0x36   :  { %1219 = vmatprep.subr.mxu0 %v1465_v3  ;;  %1225 = vmatprep.mubr.msk.f32.mxu0 %vm1466_vm1, %v1465_v3 }
  0x37   :  { %1220 = vmatpush3.msra.mxu0 %v1518_v21  ;;  %1228 = vmatprep.subr.mxu1 %v1465_v3 }
  0x38   :  { %1221 = vmatprep.subr.mxu0 %v1465_v3  ;;  %1229 = vmatpush3.msra.mxu1 %v1516_v20 }
  0x39   :  { %1222 = vmatpush3.msra.mxu0 %v1525_v26  ;;  %1230 = vmatprep.subr.mxu1 %v1465_v3 }
  0x3a   :  { %1223 = vmatprep.subr.mxu0 %v1465_v3  ;;  %1231 = vmatpush3.msra.mxu1 %v1518_v21 }
  0x3b   :  { %1224 = vmatpush3.msra.mxu0 %v1531_v29  ;;  %1232 = vmatprep.subr.mxu1 %v1465_v3 }
  0x3c   :  { %1233 = vmatpush3.msra.mxu1 %v1525_v26  ;;  %1236 = vmatprep.mubr.msk.f32.mxu1 %vm1466_vm1, %v1465_v3 }
  0x3d   :  { %1234 = vmatprep.subr.mxu1 %v1465_v3  ;;  %1239 = vmatprep.subr.mxu0 %v1465_v3 }
  0x3e   :  { %1235 = vmatpush3.msra.mxu1 %v1531_v29 }
  0x3f   :  { %1250 = vmatprep.subr.mxu1 %v1465_v3 }
  0xf4   :  { %v1205_v33 = vpop.f32.mrf.mxu0 }
  0xf5   :  { %v202_v34 = vadd.f32 %v1205_v33, %v1132_v32  ;;  %v334_v35 = vpop.f32.mrf.mxu1 }
  0xf6   :  { %v196_v36 = vpop.f32.mrf.mxu0 }
  0xf7   :  { %v224_v37 = vcombine.high %v202_v34, %v202_v34  ;;  %v231_v38 = vrot.slane %v202_v34, %v1514_v9  ;;  %1137 = vst.sshfl [vmem:[#allocation4 + $0x8] sm:$0x3 pattern:$0x76325410] %v202_v34  ;;  %v197_v39 = vadd.f32 %v1132_v32, %v196_v36  ;;  %v1216_v40 = vpop.f32.mrf.mxu1 }
  0xf9   :  { %v238_v41 = vrot.slane %v224_v37, %v1514_v9  ;;  %v239_v42 = vcombine.high %v231_v38, %v231_v38  ;;  %1138 = vst.sshfl [vmem:[#allocation4 + $0xc] sm:$0x3 pattern:$0x76325410] %v224_v37  ;;  %v207_v43 = vcombine.high %v197_v39, %v197_v39  ;;  %v214_v44 = vrot.slane %v197_v39, %v1514_v9 }
  0xfa   :  { %1135 = vst.sshfl [vmem:[#allocation4] sm:$0x3 pattern:$0x76325410] %v197_v39 }
  0xfb   :  { %v240_v45 = vcombine.high %v238_v41, %v238_v41  ;;  %254 = vst [vmem:[#allocation4 + $0xa] sm:$0x3] %v239_v42  ;;  %v221_v46 = vrot.slane %v207_v43, %v1514_v9  ;;  %v222_v47 = vcombine.high %v214_v44, %v214_v44  ;;  %1136 = vst.sshfl [vmem:[#allocation4 + $0x4] sm:$0x3 pattern:$0x76325410] %v207_v43 }
  0xfd   :  { %256 = vst [vmem:[#allocation4 + $0xe] sm:$0x3] %v240_v45  ;;  %v223_v48 = vcombine.high %v221_v46, %v221_v46  ;;  %250 = vst [vmem:[#allocation4 + $0x2] sm:$0x3] %v222_v47 }
  0xff   :  { %252 = vst [vmem:[#allocation4 + $0x6] sm:$0x3] %v223_v48 }
 0x101   :  { %v263_v49 = vld [vmem:[#allocation4] sm:$0x3] }
 0x102   :  { %v338_v50 = vadd.f32 %v334_v35, %v263_v49  ;;  %v479_v24 = vld [vmem:[#allocation4 + $0x4] sm:$0x3] }
 0x104   :  { %1307 = vtanh.f32 %v338_v50  ;;  %v1140_v53 = vmul.f32 -1.442695, %v338_v50  ;;  %v374_v4 = vld [vmem:[#allocation4 + $0x2] sm:$0x3] }
 0x106   :  { %1309 = vpow2.f32 %v1140_v53  ;;  %v584_v44 = vld [vmem:[#allocation4 + $0x6] sm:$0x3] }
 0x111   :  { %v1308_v51 = vpop.eup %1307 }
 0x112   :  { %352 = vrot.lane.b32.xlu0 %v1308_v51, %s1461_s25 }
 0x113   :  { %v1310_v54 = vpop.eup %1309 }
 0x114   :  { %v342_v55 = vadd.f32 1.0, %v1310_v54 }
 0x116   :  { %347 = vrot.lane.b32.xlu0 %v262_v52, %s1461_s25  ;;  %1311 = vrcp.f32 %v342_v55 }
 0x123   :  { %v1312_v56 = vpop.eup %1311 }
 0x184   :  { %v353_v57 = vpop.permute.xlu0 %352 }
 0x185   :  { %v355_v58 = vmul.f32 %v1312_v56, %v353_v57 }
 0x187   :  { %357 = vrot.lane.b32.xlu1 %v355_v58, %s1461_s25 }
 0x188   :  { %v348_v59 = vpop.permute.xlu0 %347 }
 0x189   :  { %v350_v60 = vmul.f32 %v1312_v56, %v348_v59 }
 0x1f9   :  { %v358_v61 = vpop.permute.xlu1 %357 }
 0x1fa   :  { %v360_v62 = vadd.f32 %v358_v61, %v350_v60 }
 0x1fc   :  { %1313 = vtanh.f32 %v360_v62 }
 0x209   :  { %v1314_v63 = vpop.eup %1313 }
 0x20a   :  { %363 = vrot.lane.b32.xlu1 %v1314_v63, %s1461_s25 }
 0x27c   :  { %v364_v0 = vpop.permute.xlu1 %363 }
 0x27d   :  { %v366_v1 = vmul.f32 %v1312_v56, %v364_v0 }
 0x27f   :  { %368 = vrot.lane.b32.xlu0 %v366_v1, %s1467_s3 }
 0x2f1   :  { %v369_v2 = vpop.permute.xlu0 %368 }
 0x2f2   :  { %372 = vst.msk [vmem:[#allocation11] sm:$0x3] %vm63_vm0, %v369_v2  ;;  %1226 = vmatmul.mubr.msk.f32.vlgmr.msra.gmra.mxu0 %vm264_vm3, %v369_v2 }
 0x2f3   :  { %1240 = vmatpush3.msra.mxu0 %v1516_v20  ;;  %1247 = vmatprep.mubr.msk.f32.mxu0 %vm1466_vm1, %v1465_v3 }
 0x2f4   :  { %1241 = vmatprep.subr.mxu0 %v1465_v3 }
 0x2f5   :  { %1242 = vmatpush3.msra.mxu0 %v1518_v21 }
 0x2f6   :  { %1243 = vmatprep.subr.mxu0 %v1465_v3 }
 0x2f7   :  { %1244 = vmatpush3.msra.mxu0 %v1525_v26 }
 0x2f8   :  { %1245 = vmatprep.subr.mxu0 %v1465_v3 }
 0x2f9   :  { %1246 = vmatpush3.msra.mxu0 %v1531_v29 }
 0x2fa   :  { %1261 = vmatprep.subr.mxu0 %v1465_v3 }
 0x3b2   :  { %v443_v5 = vpop.f32.mrf.mxu0 }
 0x3b3   :  { %v447_v6 = vadd.f32 %v443_v5, %v374_v4 }
 0x3b4   :  { %v1227_v7 = vpop.f32.mrf.mxu0 }
 0x3b5   :  { %1315 = vtanh.f32 %v447_v6  ;;  %v1142_v9 = vmul.f32 -1.442695, %v447_v6 }
 0x3b7   :  { %1317 = vpow2.f32 %v1142_v9 }
 0x3c2   :  { %v1316_v8 = vpop.eup %1315 }
 0x3c3   :  { %457 = vrot.lane.b32.xlu1 %v1316_v8, %s1461_s25 }
 0x3c4   :  { %v1318_v10 = vpop.eup %1317 }
 0x3c5   :  { %v451_v11 = vadd.f32 1.0, %v1318_v10 }
 0x3c7   :  { %1319 = vrcp.f32 %v451_v11 }
 0x3d4   :  { %v1320_v12 = vpop.eup %1319 }
 0x3d5   :  { %v455_v15 = vmul.f32 %v1320_v12, %v360_v62  ;;  %v689_v62 = vld [vmem:[#allocation4 + $0x8] sm:$0x3] }
 0x435   :  { %v458_v13 = vpop.permute.xlu1 %457 }
 0x436   :  { %v460_v14 = vmul.f32 %v1320_v12, %v458_v13 }
 0x438   :  { %462 = vrot.lane.b32.xlu0 %v460_v14, %s1461_s25 }
 0x4aa   :  { %v463_v16 = vpop.permute.xlu0 %462 }
 0x4ab   :  { %v465_v17 = vadd.f32 %v463_v16, %v455_v15 }
 0x4ad   :  { %1321 = vtanh.f32 %v465_v17 }
 0x4ba   :  { %v1322_v18 = vpop.eup %1321 }
 0x4bb   :  { %468 = vrot.lane.b32.xlu1 %v1322_v18, %s1461_s25 }
 0x52d   :  { %v469_v19 = vpop.permute.xlu1 %468 }
 0x52e   :  { %v471_v22 = vmul.f32 %v1320_v12, %v469_v19 }
 0x530   :  { %473 = vrot.lane.b32.xlu0 %v471_v22, %s1467_s3 }
 0x5a2   :  { %v474_v23 = vpop.permute.xlu0 %473 }
 0x5a3   :  { %477 = vst.msk [vmem:[#allocation11 + $0x2] sm:$0x3] %vm63_vm0, %v474_v23  ;;  %1237 = vmatmul.mubr.msk.f32.vlgmr.msra.gmra.mxu1 %vm264_vm3, %v474_v23 }
 0x5a4   :  { %1251 = vmatpush3.msra.mxu1 %v1516_v20  ;;  %1258 = vmatprep.mubr.msk.f32.mxu1 %vm1466_vm1, %v1465_v3 }
 0x5a5   :  { %1252 = vmatprep.subr.mxu1 %v1465_v3 }
 0x5a6   :  { %1253 = vmatpush3.msra.mxu1 %v1518_v21 }
 0x5a7   :  { %1254 = vmatprep.subr.mxu1 %v1465_v3 }
 0x5a8   :  { %1255 = vmatpush3.msra.mxu1 %v1525_v26 }
 0x5a9   :  { %1256 = vmatprep.subr.mxu1 %v1465_v3 }
 0x5aa   :  { %1257 = vmatpush3.msra.mxu1 %v1531_v29 }
 0x5ab   :  { %1272 = vmatprep.subr.mxu1 %v1465_v3 }
 0x663   :  { %v548_v25 = vpop.f32.mrf.mxu1 }
 0x664   :  { %v552_v27 = vadd.f32 %v548_v25, %v479_v24 }
 0x665   :  { %v1238_v28 = vpop.f32.mrf.mxu1 }
 0x666   :  { %1323 = vtanh.f32 %v552_v27  ;;  %v1144_v31 = vmul.f32 -1.442695, %v552_v27 }
 0x668   :  { %1325 = vpow2.f32 %v1144_v31 }
 0x673   :  { %v1324_v30 = vpop.eup %1323 }
 0x674   :  { %562 = vrot.lane.b32.xlu1 %v1324_v30, %s1461_s25 }
 0x675   :  { %v1326_v32 = vpop.eup %1325 }
 0x676   :  { %v556_v33 = vadd.f32 1.0, %v1326_v32 }
 0x678   :  { %1327 = vrcp.f32 %v556_v33 }
 0x685   :  { %v1328_v34 = vpop.eup %1327 }
 0x686   :  { %v560_v37 = vmul.f32 %v1328_v34, %v465_v17  ;;  %v794_v17 = vld [vmem:[#allocation4 + $0xa] sm:$0x3] }
 0x6e6   :  { %v563_v35 = vpop.permute.xlu1 %562 }
 0x6e7   :  { %v565_v36 = vmul.f32 %v1328_v34, %v563_v35 }
 0x6e9   :  { %567 = vrot.lane.b32.xlu0 %v565_v36, %s1461_s25 }
 0x75b   :  { %v568_v38 = vpop.permute.xlu0 %567 }
 0x75c   :  { %v570_v39 = vadd.f32 %v568_v38, %v560_v37 }
 0x75e   :  { %1329 = vtanh.f32 %v570_v39 }
 0x76b   :  { %v1330_v40 = vpop.eup %1329 }
 0x76c   :  { %573 = vrot.lane.b32.xlu1 %v1330_v40, %s1461_s25 }
 0x7de   :  { %v574_v41 = vpop.permute.xlu1 %573 }
 0x7df   :  { %v576_v42 = vmul.f32 %v1328_v34, %v574_v41  ;;  %v899_v34 = vld [vmem:[#allocation4 + $0xc] sm:$0x3] }
 0x7e1   :  { %578 = vrot.lane.b32.xlu0 %v576_v42, %s1467_s3 }
 0x853   :  { %v579_v43 = vpop.permute.xlu0 %578 }
 0x854   :  { %582 = vst.msk [vmem:[#allocation11 + $0x4] sm:$0x3] %vm63_vm0, %v579_v43  ;;  %1248 = vmatmul.mubr.msk.f32.vlgmr.msra.gmra.mxu0 %vm264_vm3, %v579_v43 }
 0x855   :  { %1262 = vmatpush3.msra.mxu0 %v1516_v20  ;;  %1269 = vmatprep.mubr.msk.f32.mxu0 %vm1466_vm1, %v1465_v3 }
 0x856   :  { %1263 = vmatprep.subr.mxu0 %v1465_v3 }
 0x857   :  { %1264 = vmatpush3.msra.mxu0 %v1518_v21 }
 0x858   :  { %1265 = vmatprep.subr.mxu0 %v1465_v3 }
 0x859   :  { %1266 = vmatpush3.msra.mxu0 %v1525_v26 }
 0x85a   :  { %1267 = vmatprep.subr.mxu0 %v1465_v3 }
 0x85b   :  { %1268 = vmatpush3.msra.mxu0 %v1531_v29 }
 0x85c   :  { %1283 = vmatprep.subr.mxu0 %v1465_v3 }
 0x914   :  { %v653_v45 = vpop.f32.mrf.mxu0 }
 0x915   :  { %v657_v46 = vadd.f32 %v653_v45, %v584_v44 }
 0x916   :  { %v1249_v47 = vpop.f32.mrf.mxu0 }
 0x917   :  { %1331 = vtanh.f32 %v657_v46  ;;  %v1146_v49 = vmul.f32 -1.442695, %v657_v46 }
 0x919   :  { %1333 = vpow2.f32 %v1146_v49 }
 0x924   :  { %v1332_v48 = vpop.eup %1331 }
 0x925   :  { %667 = vrot.lane.b32.xlu1 %v1332_v48, %s1461_s25 }
 0x926   :  { %v1334_v50 = vpop.eup %1333 }
 0x927   :  { %v661_v51 = vadd.f32 1.0, %v1334_v50 }
 0x929   :  { %1335 = vrcp.f32 %v661_v51 }
 0x936   :  { %v1336_v52 = vpop.eup %1335 }
 0x937   :  { %v665_v55 = vmul.f32 %v1336_v52, %v570_v39 }
 0x997   :  { %v668_v53 = vpop.permute.xlu1 %667 }
 0x998   :  { %v670_v54 = vmul.f32 %v1336_v52, %v668_v53 }
 0x99a   :  { %672 = vrot.lane.b32.xlu0 %v670_v54, %s1461_s25 }
 0xa0c   :  { %v673_v56 = vpop.permute.xlu0 %672 }
 0xa0d   :  { %v675_v57 = vadd.f32 %v673_v56, %v665_v55 }
 0xa0f   :  { %1337 = vtanh.f32 %v675_v57 }
 0xa1c   :  { %v1338_v58 = vpop.eup %1337 }
 0xa1d   :  { %678 = vrot.lane.b32.xlu1 %v1338_v58, %s1461_s25 }
 0xa8f   :  { %v679_v59 = vpop.permute.xlu1 %678 }
 0xa90   :  { %v681_v60 = vmul.f32 %v1336_v52, %v679_v59  ;;  %v1004_v52 = vld [vmem:[#allocation4 + $0xe] sm:$0x3] }
 0xa92   :  { %683 = vrot.lane.b32.xlu0 %v681_v60, %s1467_s3 }
 0xb04   :  { %v684_v61 = vpop.permute.xlu0 %683 }
 0xb05   :  { %687 = vst.msk [vmem:[#allocation11 + $0x6] sm:$0x3] %vm63_vm0, %v684_v61  ;;  %1259 = vmatmul.mubr.msk.f32.vlgmr.msra.gmra.mxu1 %vm264_vm3, %v684_v61 }
 0xb06   :  { %1273 = vmatpush3.msra.mxu1 %v1516_v20  ;;  %1280 = vmatprep.mubr.msk.f32.mxu1 %vm1466_vm1, %v1465_v3 }
 0xb07   :  { %1274 = vmatprep.subr.mxu1 %v1465_v3 }
 0xb08   :  { %1275 = vmatpush3.msra.mxu1 %v1518_v21 }
 0xb09   :  { %1276 = vmatprep.subr.mxu1 %v1465_v3 }
 0xb0a   :  { %1277 = vmatpush3.msra.mxu1 %v1525_v26 }
 0xb0b   :  { %1278 = vmatprep.subr.mxu1 %v1465_v3 }
 0xb0c   :  { %1279 = vmatpush3.msra.mxu1 %v1531_v29 }
 0xbc5   :  { %v758_v63 = vpop.f32.mrf.mxu1 }
 0xbc6   :  { %v762_v0 = vadd.f32 %v758_v63, %v689_v62 }
 0xbc7   :  { %v1260_v1 = vpop.f32.mrf.mxu1 }
 0xbc8   :  { %1339 = vtanh.f32 %v762_v0  ;;  %v1148_v4 = vmul.f32 -1.442695, %v762_v0 }
 0xbca   :  { %1341 = vpow2.f32 %v1148_v4 }
 0xbd5   :  { %v1340_v2 = vpop.eup %1339 }
 0xbd6   :  { %772 = vrot.lane.b32.xlu1 %v1340_v2, %s1461_s25 }
 0xbd7   :  { %v1342_v5 = vpop.eup %1341 }
 0xbd8   :  { %v766_v6 = vadd.f32 1.0, %v1342_v5 }
 0xbda   :  { %1343 = vrcp.f32 %v766_v6 }
 0xbe7   :  { %v1344_v7 = vpop.eup %1343 }
 0xbe8   :  { %v770_v10 = vmul.f32 %v1344_v7, %v675_v57 }
 0xc48   :  { %v773_v8 = vpop.permute.xlu1 %772 }
 0xc49   :  { %v775_v9 = vmul.f32 %v1344_v7, %v773_v8 }
 0xc4b   :  { %777 = vrot.lane.b32.xlu0 %v775_v9, %s1461_s25 }
 0xcbd   :  { %v778_v11 = vpop.permute.xlu0 %777 }
 0xcbe   :  { %v780_v12 = vadd.f32 %v778_v11, %v770_v10 }
 0xcc0   :  { %1345 = vtanh.f32 %v780_v12 }
 0xccd   :  { %v1346_v13 = vpop.eup %1345 }
 0xcce   :  { %783 = vrot.lane.b32.xlu1 %v1346_v13, %s1461_s25 }
 0xd40   :  { %v784_v14 = vpop.permute.xlu1 %783 }
 0xd41   :  { %v786_v15 = vmul.f32 %v1344_v7, %v784_v14 }
 0xd43   :  { %788 = vrot.lane.b32.xlu0 %v786_v15, %s1467_s3 }
 0xdb5   :  { %v789_v16 = vpop.permute.xlu0 %788 }
 0xdb6   :  { %792 = vst.msk [vmem:[#allocation11 + $0x8] sm:$0x3] %vm63_vm0, %v789_v16  ;;  %1270 = vmatmul.mubr.msk.f32.vlgmr.msra.gmra.mxu0 %vm264_vm3, %v789_v16 }
 0xdb7   :  { %1284 = vmatpush3.msra.mxu0 %v1516_v20  ;;  %1291 = vmatprep.mubr.msk.f32.mxu0 %vm1466_vm1, %v1465_v3 }
 0xdb8   :  { %1285 = vmatprep.subr.mxu0 %v1465_v3 }
 0xdb9   :  { %1286 = vmatpush3.msra.mxu0 %v1518_v21 }
 0xdba   :  { %1287 = vmatprep.subr.mxu0 %v1465_v3 }
 0xdbb   :  { %1288 = vmatpush3.msra.mxu0 %v1525_v26 }
 0xdbc   :  { %1289 = vmatprep.subr.mxu0 %v1465_v3 }
 0xdbd   :  { %1290 = vmatpush3.msra.mxu0 %v1531_v29 }
 0xe76   :  { %v863_v18 = vpop.f32.mrf.mxu0 }
 0xe77   :  { %v867_v19 = vadd.f32 %v863_v18, %v794_v17 }
 0xe78   :  { %v1271_v22 = vpop.f32.mrf.mxu0 }
 0xe79   :  { %1347 = vtanh.f32 %v867_v19  ;;  %v1150_v23 = vmul.f32 -1.442695, %v867_v19 }
 0xe7b   :  { %1349 = vpow2.f32 %v1150_v23 }
 0xe86   :  { %v1348_v20 = vpop.eup %1347 }
 0xe87   :  { %877 = vrot.lane.b32.xlu1 %v1348_v20, %s1461_s25 }
 0xe88   :  { %v1350_v24 = vpop.eup %1349 }
 0xe89   :  { %v871_v21 = vadd.f32 1.0, %v1350_v24 }
 0xe8b   :  { %1351 = vrcp.f32 %v871_v21 }
 0xe98   :  { %v1352_v25 = vpop.eup %1351 }
 0xe99   :  { %v875_v3 = vmul.f32 %v1352_v25, %v780_v12 }
 0xef9   :  { %v878_v27 = vpop.permute.xlu1 %877 }
 0xefa   :  { %v880_v26 = vmul.f32 %v1352_v25, %v878_v27 }
 0xefc   :  { %882 = vrot.lane.b32.xlu0 %v880_v26, %s1461_s25 }
 0xf6e   :  { %v883_v29 = vpop.permute.xlu0 %882 }
 0xf6f   :  { %v885_v28 = vadd.f32 %v883_v29, %v875_v3 }
 0xf71   :  { %1353 = vtanh.f32 %v885_v28 }
 0xf7e   :  { %v1354_v30 = vpop.eup %1353 }
 0xf7f   :  { %888 = vrot.lane.b32.xlu1 %v1354_v30, %s1461_s25 }
 0xff1   :  { %v889_v31 = vpop.permute.xlu1 %888 }
 0xff2   :  { %v891_v32 = vmul.f32 %v1352_v25, %v889_v31 }
 0xff4   :  { %893 = vrot.lane.b32.xlu0 %v891_v32, %s1467_s3 }
0x1066   :  { %v894_v33 = vpop.permute.xlu0 %893 }
0x1067   :  { %897 = vst.msk [vmem:[#allocation11 + $0xa] sm:$0x3] %vm63_vm0, %v894_v33  ;;  %1281 = vmatmul.mubr.msk.f32.vlgmr.msra.gmra.mxu1 %vm264_vm3, %v894_v33 }
0x1127   :  { %v968_v35 = vpop.f32.mrf.mxu1 }
0x1128   :  { %v972_v36 = vadd.f32 %v968_v35, %v899_v34 }
0x1129   :  { %v1282_v37 = vpop.f32.mrf.mxu1 }
0x112a   :  { %1355 = vtanh.f32 %v972_v36  ;;  %v1152_v39 = vmul.f32 -1.442695, %v972_v36 }
0x112c   :  { %1357 = vpow2.f32 %v1152_v39 }
0x1137   :  { %v1356_v38 = vpop.eup %1355 }
0x1138   :  { %982 = vrot.lane.b32.xlu1 %v1356_v38, %s1461_s25 }
0x1139   :  { %v1358_v40 = vpop.eup %1357 }
0x113a   :  { %v976_v41 = vadd.f32 1.0, %v1358_v40 }
0x113c   :  { %1359 = vrcp.f32 %v976_v41 }
0x1149   :  { %v1360_v42 = vpop.eup %1359 }
0x114a   :  { %v980_v45 = vmul.f32 %v1360_v42, %v885_v28 }
0x11aa   :  { %v983_v43 = vpop.permute.xlu1 %982 }
0x11ab   :  { %v985_v44 = vmul.f32 %v1360_v42, %v983_v43 }
0x11ad   :  { %987 = vrot.lane.b32.xlu0 %v985_v44, %s1461_s25 }
0x121f   :  { %v988_v46 = vpop.permute.xlu0 %987 }
0x1220   :  { %v990_v47 = vadd.f32 %v988_v46, %v980_v45 }
0x1222   :  { %1361 = vtanh.f32 %v990_v47 }
0x122f   :  { %v1362_v48 = vpop.eup %1361 }
0x1230   :  { %993 = vrot.lane.b32.xlu1 %v1362_v48, %s1461_s25 }
0x12a2   :  { %v994_v49 = vpop.permute.xlu1 %993 }
0x12a3   :  { %v996_v50 = vmul.f32 %v1360_v42, %v994_v49 }
0x12a5   :  { %998 = vrot.lane.b32.xlu0 %v996_v50, %s1467_s3 }
0x1317   :  { %v999_v51 = vpop.permute.xlu0 %998 }
0x1318   :  { %1002 = vst.msk [vmem:[#allocation11 + $0xc] sm:$0x3] %vm63_vm0, %v999_v51  ;;  %1292 = vmatmul.mubr.msk.f32.vlgmr.msra.gmra.mxu0 %vm264_vm3, %v999_v51 }
0x13d8   :  { %v1073_v53 = vpop.f32.mrf.mxu0 }
0x13d9   :  { %v1077_v54 = vadd.f32 %v1073_v53, %v1004_v52 }
0x13da   :  { %v1293_v55 = vpop.f32.mrf.mxu0 }
0x13db   :  { %1363 = vtanh.f32 %v1077_v54  ;;  %v1154_v57 = vmul.f32 -1.442695, %v1077_v54 }
0x13dd   :  { %1365 = vpow2.f32 %v1154_v57 }
0x13e8   :  { %v1364_v56 = vpop.eup %1363 }
0x13e9   :  { %1087 = vrot.lane.b32.xlu1 %v1364_v56, %s1461_s25 }
0x13ea   :  { %v1366_v58 = vpop.eup %1365 }
0x13eb   :  { %v1081_v59 = vadd.f32 1.0, %v1366_v58 }
0x13ed   :  { %1367 = vrcp.f32 %v1081_v59 }
0x13fa   :  { %v1368_v60 = vpop.eup %1367 }
0x13fb   :  { %v1085_v63 = vmul.f32 %v1368_v60, %v990_v47 }
0x145b   :  { %v1088_v61 = vpop.permute.xlu1 %1087 }
0x145c   :  { %v1090_v62 = vmul.f32 %v1368_v60, %v1088_v61 }
0x145e   :  { %1092 = vrot.lane.b32.xlu0 %v1090_v62, %s1461_s25 }
0x14d0   :  { %v1093_v0 = vpop.permute.xlu0 %1092 }
0x14d1   :  { %v1095_v1 = vadd.f32 %v1093_v0, %v1085_v63 }
0x14d3   :  { %1369 = vtanh.f32 %v1095_v1 }
0x14e0   :  { %v1370_v2 = vpop.eup %1369 }
0x14e1   :  { %1098 = vrot.lane.b32.xlu1 %v1370_v2, %s1461_s25 }
0x14e5   :  { %1110 = vrot.lane.b32.xlu1 %v1095_v1, %s1468_s7 }
0x1553   :  { %v1099_v4 = vpop.permute.xlu1 %1098 }
0x1554   :  { %v1101_v5 = vmul.f32 %v1368_v60, %v1099_v4 }
0x1556   :  { %1103 = vrot.lane.b32.xlu0 %v1101_v5, %s1467_s3 }
0x1557   :  { %v1111_v6 = vpop.permute.xlu1 %1110 }
0x1558   :  { %1113 = vst.msk [vmem:[#allocation3] sm:$0x3] %vm63_vm0, %v1111_v6 }
0x15c8   :  { %v1104_v7 = vpop.permute.xlu0 %1103 }
0x15c9   :  { %1107 = vst.msk [vmem:[#allocation11 + $0xe] sm:$0x3] %vm63_vm0, %v1104_v7  ;;  %1108 = vst.msk [vmem:[#allocation2] sm:$0x3] %vm63_vm0, %v1104_v7 }
0x15ca   :  { %1442 = shalt.err (!%p1439_p5)
}
0x15cb   :  { %1125 = dma.vmem_to_hbm [thread:$0]  %s1120_s9, 256, %s1675_s4, [#allocation7], %s1461_s25, %s1461_s25, %s1462_s26  }
0x15cc   :  { %1455 = dma.done.wait [#allocation7], 256  }
0x15cd   :  { %1456 = vsyncadd [#allocation7], 4294967040 }
0x15ce   :  { %1129 = vsyncpa [#allocation6], 1 }
0x15cf   :  { %1130 = vsyncpa [#allocation9], 1 }
0x15d0   :  { %1131 = vsyncpa [#allocation7], 1 }

</bundles_post_ra>
